<compile_context>
chip_gen: v6e
topology: v6e:2x2x1
jax: 0.10.0
libtpu: 0.0.40
codegen_flags: <defaults>
</compile_context>

<pallas_src>
import functools

import numpy as np
import jax
import jax.numpy as jnp
from jax import lax
from jax.experimental import pallas as pl
from jax.experimental.pallas import tpu as pltpu


def _round_up(x, m):
    return (x + m - 1) // m * m


def distgen_kernel(attn_ref, src_ref, vocab_ref, out_ref):
    """One (tm decoder steps) x (tv vocab columns) tile of a single batch element.

    attn_ref  : (tm, Lp) f32   slot 0 = p_gen, slots 1..L = (1-p_gen)*attn, rest 0
    src_ref   : (Lp, 1)  i32   slot j = vocab id of encoder position j-1; earlier
                               duplicates / padding / p_gen slot are -1 sentinels
    vocab_ref : (tm, tv)       vocab distribution slice (caller dtype)
    out_ref   : (tm, tv)       final distribution slice (caller dtype)
    """
    tv = out_ref.shape[-1]
    lp = src_ref.shape[0]
    v_base = pl.program_id(2) * tv                        # base column of this V tile

    packed = attn_ref[...]                                # (tm, Lp) f32
    p_gen = packed[:, 0:1]                                # (tm, 1)

    # Shift the tiny id operand by the V-tile base instead of adding v_base to
    # the (Lp, tv) iota (saves Lp*tv int adds per step).  The -1 sentinel stays
    # negative and ids belonging to other tiles fall outside [0, tv), so they
    # never match a column -> exact scatter_-overwrite semantics.
    ids = src_ref[...] - v_base                           # (Lp, 1) i32
    col = lax.broadcasted_iota(jnp.int32, (lp, tv), 1)
    one_hot = (ids == col).astype(jnp.bfloat16)           # (Lp, tv), 0/1 exact in bf16

    # dim-1 scatter == one-hot matmul on the MXU.  f32 x f32 is a multi-pass MXU
    # emulation, so split `packed` into bf16 hi/lo parts: bf16 x {0,1} products
    # are exact in the f32 accumulator and at most one term per column is
    # nonzero, so proj reconstructs packed to ~2^-18 relative error.
    hi = packed.astype(jnp.bfloat16)
    lo = (packed - hi.astype(jnp.float32)).astype(jnp.bfloat16)
    proj = (jnp.dot(hi, one_hot, preferred_element_type=jnp.float32)
            + jnp.dot(lo, one_hot, preferred_element_type=jnp.float32))

    out_ref[...] = (proj + p_gen * vocab_ref[...].astype(jnp.float32)
                    ).astype(out_ref.dtype)


def _auto_v_tile():
    """Vocab-tile target, scaled to the chip's VMEM (conservative on v7x)."""
    try:
        info = pltpu.get_tpu_info()
        vmem = getattr(info, "vmem_capacity_bytes", None)
        if vmem is not None and vmem >= 96 * 1024 * 1024:
            return 8192                    # v5e / v6e: 128 MiB VMEM
    except Exception:
        pass
    return 4096                            # v7x (64 MiB VMEM) / unknown


def _pick_v_tile(v_pad128, target):
    """Largest multiple-of-128 divisor of v_pad128 that is <= target."""
    m = v_pad128 // 128
    dmax = max(target // 128, 1)
    best = 1
    for d in range(1, min(m, dmax) + 1):
        if m % d == 0:
            best = d
    tv = 128 * best
    # Awkward vocab sizes (V/128 near-prime) can force degenerate 128/256-wide
    # tiles; accept a one-off pad of V instead of paying the fixed ~0.35us grid
    # step overhead on thousands of tiny tiles.
    if tv < 512 and v_pad128 > 2 * target:
        tv = _round_up(min(target, v_pad128), 128)
    return tv


def _pick_row_tile(t, row_tile):
    """Row-tile choice: big tiles, minimal row padding (padding = extra HBM pass)."""
    if t <= row_tile:
        return t, t                        # one block == full dim; no /8 constraint
    rt = _round_up(row_tile, 8)
    best_tm, best_pad = 8, _round_up(t, 8) - t
    for tm in range(rt, 7, -8):
        pad = _round_up(t, tm) - t
        if pad * 32 <= t:                  # <= ~3% padded rows: take the biggest tm
            return tm, t + pad
        if pad < best_pad:
            best_tm, best_pad = tm, pad
    return best_tm, t + best_pad


@functools.partial(
    jax.jit,
    static_argnames=("decoder_batch_len", "row_tile", "v_tile",
                     "vocab_transport_dtype", "alias_vocab_into_output"))
def dist_gen(vocab_ds, attns, p_gens, sources, decoder_batch_len,
             row_tile=256, v_tile=None, vocab_transport_dtype=None,
             alias_vocab_into_output=False):
    """final = scatter_overwrite(1, sources, (1-p_gen)*attn) + p_gen * vocab_ds.

    The whole wrapper is jitted so the (cheap) reshapes around the kernel fuse
    into one XLA program; the vocab tensor is read and the result written in the
    caller's dtype, and no pad/cast pass touches it when V % 128 == 0 and T
    tiles cleanly.  `vocab_transport_dtype` can force a narrower transport dtype
    (only useful if the caller's data is wider than it needs to be).
    """
    TB, V = vocab_ds.shape
    L, B = sources.shape
    T = int(decoder_batch_len)
    assert TB == T * B, "vocab_ds rows must equal decoder_batch_len * batch_size"

    f32 = jnp.float32
    out_dtype = vocab_ds.dtype

    # ---------------- tile selection ------------------------------------------
    Lp = _round_up(L + 1, 128)                    # slot 0 carries p_gen
    if v_tile is None:
        v_tile = _auto_v_tile()
    V_pad128 = _round_up(V, 128)
    tv = _pick_v_tile(V_pad128, max(int(v_tile), 128))
    tm, T_pad = _pick_row_tile(T, int(row_tile))

    transport_dtype = (vocab_transport_dtype if vocab_transport_dtype is not None
                       else vocab_ds.dtype)
    in_itemsize = jnp.dtype(transport_dtype).itemsize
    # Small-T regime: widen tv so each grid step still moves >= ~2 MiB.
    if tm * tv * in_itemsize < (1 << 21) and tv < V_pad128:
        want = _round_up(-(-(1 << 21) // max(tm * in_itemsize, 1)), 128)
        tv = _pick_v_tile(V_pad128, min(want, 8192))
    V_pad = _round_up(V_pad128, tv)

    # ---------------- pack (p_gen | (1-p_gen)*attn) into one small operand -----
    p_gens_f = p_gens.astype(f32)
    attn_scaled = (1.0 - p_gens_f) * attns.astype(f32)            # (TB, L) -- tiny vs V
    packed = jnp.concatenate([p_gens_f, attn_scaled], axis=1)     # (TB, 1+L)
    packed = jnp.pad(packed, ((0, 0), (0, Lp - (1 + L))))         # (TB, Lp)
    packed = packed.reshape(T, B, Lp)
    if T_pad != T:
        packed = jnp.pad(packed, ((0, T_pad - T), (0, 0), (0, 0)))
    attn_packed = packed.reshape(T_pad, B * Lp)                   # (T_pad, B*Lp)

    # ---------------- vocab: caller dtype, pad only when unavoidable -----------
    vocab3 = vocab_ds.reshape(T, B, V)
    if V_pad != V:
        vocab3 = jnp.pad(vocab3, ((0, 0), (0, 0), (0, V_pad - V)))
    if T_pad != T:
        vocab3 = jnp.pad(vocab3, ((0, T_pad - T), (0, 0), (0, 0)))
    vocab2 = vocab3.reshape(T_pad, B * V_pad)                     # (T_pad, B*V_pad)
    if vocab_transport_dtype is not None:
        vocab2 = vocab2.astype(vocab_transport_dtype)

    # ---------------- sources: transpose, last-wins dedup, -1 sentinel ---------
    st = sources.T.astype(jnp.int32)                              # (B, L)
    pos = jnp.arange(L)
    eq_later = (st[:, :, None] == st[:, None, :]) & (pos[None, :, None] < pos[None, None, :])
    dup_later = jnp.any(eq_later, axis=2)                         # (B, L)
    st_dedup = jnp.where(dup_later, jnp.int32(-1), st)            # keep last occurrence
    src_packed = jnp.full((B, Lp), -1, jnp.int32).at[:, 1:1 + L].set(st_dedup)
    src_packed = src_packed.reshape(B * Lp, 1)                    # (B*Lp, 1)

    # ---------------- pallas call ----------------------------------------------
    n_vt = V_pad // tv
    grid = (T_pad // tm, B, n_vt)

    out_itemsize = jnp.dtype(out_dtype).itemsize
    tile_bytes = tm * tv * max(in_itemsize, out_itemsize)
    if tile_bytes <= (4 << 20):
        vmem_limit = 48 << 20              # safe on every chip incl. 64 MiB v7x
    else:                                  # big tiles only chosen on 128 MiB chips
        vmem_limit = min(96 << 20, 8 * tile_bytes + (24 << 20))

    io_aliases = {}
    if alias_vocab_into_output and vocab2.dtype == jnp.dtype(out_dtype):
        io_aliases = {2: 0}                # reuse the vocab HBM slab for the output

    out2 = pl.pallas_call(
        distgen_kernel,
        out_shape=jax.ShapeDtypeStruct((T_pad, B * V_pad), out_dtype),
        grid_spec=pltpu.PrefetchScalarGridSpec(
            num_scalar_prefetch=0,
            grid=grid,
            in_specs=[
                # p_gen + scaled attention: resident across all V tiles of a slab
                pl.BlockSpec((tm, Lp), lambda ti, b, vj: (ti, b)),
                # dedup'd source ids of batch element b (also V-tile invariant)
                pl.BlockSpec((Lp, 1), lambda ti, b, vj: (b, 0)),
                # vocab slab of batch element b, V tile vj
                pl.BlockSpec((tm, tv), lambda ti, b, vj: (ti, b * n_vt + vj)),
            ],
            out_specs=pl.BlockSpec((tm, tv), lambda ti, b, vj: (ti, b * n_vt + vj)),
        ),
        compiler_params=pltpu.CompilerParams(
            # every (ti, b, vj) writes a distinct output block -> no reduction
            # axis; all-parallel lets megacore / dual-TC chips shard vocab too.
            dimension_semantics=("parallel", "parallel", "parallel"),
            vmem_limit_bytes=int(vmem_limit)),
        input_output_aliases=io_aliases,
    )(attn_packed, src_packed, vocab2)

    if T_pad == T and V_pad == V:
        return out2.reshape(TB, V)                                 # pure view
    return out2.reshape(T_pad, B, V_pad)[:T, :, :V].reshape(TB, V)


def reference_numpy(vocab_ds, attns, p_gens, sources, decoder_batch_len):
    vocab_ds = np.asarray(vocab_ds, np.float32)
    attns = np.asarray(attns, np.float32)
    p_gens = np.asarray(p_gens, np.float32)
    sources = np.asarray(sources)
    TB, V = vocab_ds.shape
    L, B = sources.shape
    vocab_dists = p_gens * vocab_ds
    attn_dists = (1.0 - p_gens) * attns
    sources_rep = np.tile(sources.T, (decoder_batch_len, 1))       # (TB, L)
    proj = np.zeros((TB, V), dtype=np.float32)
    for r in range(TB):
        for j in range(L):                                         # sequential: last wins
            proj[r, sources_rep[r, j]] = attn_dists[r, j]
    return proj + vocab_dists


if __name__ == "__main__":
    def _run_case(B, T, L, V, seed, dtype=jnp.float32, src_max=None,
                  rtol=1e-5, atol=1e-5, **kw):
        TB = T * B
        key = jax.random.PRNGKey(seed)
        k1, k2, k3, k4 = jax.random.split(key, 4)
        vocab_ds = jax.nn.softmax(jax.random.normal(k1, (TB, V), jnp.float32),
                                  axis=-1).astype(dtype)
        attns = jax.nn.softmax(jax.random.normal(k2, (TB, L), jnp.float32),
                               axis=-1).astype(dtype)
        p_gens = jax.nn.sigmoid(jax.random.normal(k3, (TB, 1), jnp.float32)).astype(dtype)
        hi = V if src_max is None else min(V, src_max)
        sources = jax.random.randint(k4, (L, B), 0, hi, dtype=jnp.int32)

        out = jax.block_until_ready(
            dist_gen(vocab_ds, attns, p_gens, sources, decoder_batch_len=T, **kw))
        assert out.shape == (TB, V) and out.dtype == jnp.dtype(dtype)
        ref = reference_numpy(vocab_ds, attns, p_gens, sources, T)
        np.testing.assert_allclose(np.asarray(out, np.float32), ref,
                                   rtol=rtol, atol=atol)

    # primary small case (128-aligned vocab: zero host-side pad/slice passes)
    _run_case(B=2, T=4, L=8, V=128, seed=0)
    # odd shapes: exercises V padding to 128 and non-multiple-of-8 row counts
    _run_case(B=3, T=5, L=5, V=100, seed=1)
    # forced duplicate source ids: verifies the last-wins scatter_ overwrite
    _run_case(B=2, T=4, L=8, V=128, seed=2, src_max=4)
    # multi-row-tile path (T > row_tile), no padding
    _run_case(B=2, T=40, L=8, V=128, seed=4, row_tile=16)
    # bf16 in / bf16 out + vocab->output HBM aliasing (precision-limited tolerance)
    _run_case(B=2, T=4, L=8, V=256, seed=3, dtype=jnp.bfloat16,
              alias_vocab_into_output=True, rtol=2e-2, atol=1e-2)

    print("KERNEL_OK")
</pallas_src>

<mosaic_0001>
module attributes {stable_mosaic.version = 11 : i64} {
  func.func @distgen_kernel(%arg0: i32, %arg1: i32, %arg2: i32, %arg3: memref<4x128xf32, #tpu.memory_space<vmem>>, %arg4: memref<128x1xi32, #tpu.memory_space<vmem>>, %arg5: memref<4x128xf32, #tpu.memory_space<vmem>>, %arg6: memref<4x128xf32, #tpu.memory_space<vmem>>) attributes {dimension_semantics = [#tpu.dimension_semantics<parallel>, #tpu.dimension_semantics<parallel>, #tpu.dimension_semantics<parallel>], iteration_bounds = array<i64: 1, 2, 1>, scalar_prefetch = 0 : i64, scratch_operands = 0 : i64, tpu.core_type = #tpu.core_type<tc>, window_params = [{transform_indices = @transform_0, window_bounds = array<i64: 4, 128>}, {transform_indices = @transform_1, window_bounds = array<i64: 128, 1>}, {transform_indices = @transform_2, window_bounds = array<i64: 4, 128>}, {transform_indices = @transform_3, window_bounds = array<i64: 4, 128>}]} {
    %c128_i32 = arith.constant 128 : i32
    %0 = arith.muli %arg2, %c128_i32 : i32
    %c0 = arith.constant 0 : index
    %c0_0 = arith.constant 0 : index
    %1 = vector.load %arg3[%c0, %c0_0] : memref<4x128xf32, #tpu.memory_space<vmem>>, vector<4x128xf32>
    %2 = vector.extract_strided_slice %1 {offsets = [0, 0], sizes = [4, 1], strides = [1, 1]} : vector<4x128xf32> to vector<4x1xf32>
    %c0_1 = arith.constant 0 : index
    %c0_2 = arith.constant 0 : index
    %3 = vector.load %arg4[%c0_1, %c0_2] : memref<128x1xi32, #tpu.memory_space<vmem>>, vector<128x1xi32>
    %4 = vector.broadcast %0 : i32 to vector<128x1xi32>
    %5 = arith.subi %3, %4 : vector<128x1xi32>
    %6 = tpu.iota {dimensions = array<i32: 1>} : vector<128x128xi32>
    %7 = vector.broadcast %5 : vector<128x1xi32> to vector<128x128xi32>
    %8 = arith.cmpi eq, %7, %6 : vector<128x128xi32>
    %9 = arith.extui %8 : vector<128x128xi1> to vector<128x128xi32>
    %10 = arith.sitofp %9 : vector<128x128xi32> to vector<128x128xf32>
    %11 = arith.truncf %10 : vector<128x128xf32> to vector<128x128xbf16>
    %12 = arith.truncf %1 : vector<4x128xf32> to vector<4x128xbf16>
    %13 = arith.extf %12 : vector<4x128xbf16> to vector<4x128xf32>
    %14 = arith.subf %1, %13 : vector<4x128xf32>
    %15 = arith.truncf %14 : vector<4x128xf32> to vector<4x128xbf16>
    %cst = arith.constant dense<0.000000e+00> : vector<4x128xf32>
    %16 = tpu.matmul %12, %11, %cst {dimension_numbers = #tpu.dot_dimension_numbers<[1], [0], [0], [1], [0, 0, 1, 1], [], []>} : vector<4x128xbf16>, vector<128x128xbf16>, vector<4x128xf32> -> vector<4x128xf32>
    %cst_3 = arith.constant dense<0.000000e+00> : vector<4x128xf32>
    %17 = tpu.matmul %15, %11, %cst_3 {dimension_numbers = #tpu.dot_dimension_numbers<[1], [0], [0], [1], [0, 0, 1, 1], [], []>} : vector<4x128xbf16>, vector<128x128xbf16>, vector<4x128xf32> -> vector<4x128xf32>
    %18 = arith.addf %16, %17 : vector<4x128xf32>
    %c0_4 = arith.constant 0 : index
    %c0_5 = arith.constant 0 : index
    %19 = vector.load %arg5[%c0_4, %c0_5] : memref<4x128xf32, #tpu.memory_space<vmem>>, vector<4x128xf32>
    %20 = vector.broadcast %2 : vector<4x1xf32> to vector<4x128xf32>
    %21 = arith.mulf %20, %19 : vector<4x128xf32>
    %22 = arith.addf %18, %21 : vector<4x128xf32>
    %c0_6 = arith.constant 0 : index
    %c0_7 = arith.constant 0 : index
    %23 = vector.load %arg6[%c0_6, %c0_7] : memref<4x128xf32, #tpu.memory_space<vmem>>, vector<4x128xf32>
    tpu.vector_store %arg6[%c0_6, %c0_7], %22 {strides = array<i32>} : memref<4x128xf32, #tpu.memory_space<vmem>>, vector<4x128xf32>,
    return
  }
  func.func @transform_0(%arg0: i32, %arg1: i32, %arg2: i32) -> (i32, i32) {
    %c0_i32 = arith.constant 0 : i32
    return %arg0, %arg1 : i32, i32
  }
  func.func @transform_1(%arg0: i32, %arg1: i32, %arg2: i32) -> (i32, i32) {
    %c0_i32 = arith.constant 0 : i32
    %c0_i32_0 = arith.constant 0 : i32
    return %arg1, %c0_i32 : i32, i32
  }
  func.func @transform_2(%arg0: i32, %arg1: i32, %arg2: i32) -> (i32, i32) {
    %c1_i32 = arith.constant 1 : i32
    %0 = arith.muli %arg1, %c1_i32 : i32
    %1 = arith.addi %0, %arg2 : i32
    %c0_i32 = arith.constant 0 : i32
    return %arg0, %1 : i32, i32
  }
  func.func @transform_3(%arg0: i32, %arg1: i32, %arg2: i32) -> (i32, i32) {
    %c1_i32 = arith.constant 1 : i32
    %0 = arith.muli %arg1, %c1_i32 : i32
    %1 = arith.addi %0, %arg2 : i32
    %c0_i32 = arith.constant 0 : i32
    return %arg0, %1 : i32, i32
  }
}

</mosaic_0001>

<bundles_post_ra>
// kernel: dist_gen.1
= control target key start
LH: loop header
LB: loop body
LE: loop exit
PB: predicated region body
PF: predicated region fallthrough
CT: control target
= control target key end

     0   :  { %s825_s12 = smov 0   ;;  %s827_s13 = smov 0   ;;  %s950_s0 = inlined_call_operand.vmem [shape: f32[4,256], index: 0, kind: input, shape index: {}]   ;;  %s951_s1 = inlined_call_operand.vmem [shape: s32[256,1], index: 1, kind: input, shape index: {}]   ;;  %s952_s2 = inlined_call_operand.vmem [shape: f32[4,256], index: 2, kind: input, shape index: {}]   ;;  %s953_s3 = inlined_call_operand.vmem [shape: f32[4,256], index: 3, kind: output, shape index: {}]  }
   0x1   :  { %s829_s14 = smov 0  }
   0x2 LB: > { %s28_s15 = sadd.s32 1, %s795_s13  ;;  %p633_p0 = scmp.ge.s32.totalorder %s799_s14, 1  ;;  %s799_s14 = sphi %s829_s14, %s13_s14   ;;  %s795_s13 = sphi %s827_s13, %s955_s13   ;;  %s791_s12 = sphi %s825_s12, %s954_s12  }
   0x3   : > { %p30_p1 = scmp.ge.s32.totalorder %s28_s15, 2  ;;  %p195_p2 = scmp.lt.s32.totalorder %s799_s14, 3 }
   0x5   : > { %s957_s15 = smov (%p30_p1, %s28_s15), 0  ;;  %p196_p3 = pnand %p633_p0, %p195_p2 }
   0x6   : > { %s635_s16 = sshll.u32 (!%p196_p3), %s791_s12, 4  ;;  %p242_p5 = scmp.lt.s32.totalorder (!%p196_p3), %s791_s12, 1 }
   0x7   : > { %199 = sbr.rel (%p196_p3) target bundleno = 376 (0x178), region = 32  ;;  %p249_p4 = scmp.lt.s32.totalorder (!%p196_p3), %s635_s16, 31 }
   0xc   : > { %v801_v0 = vmov 0   ;;  %s959_s16 = smov (!%p249_p4, %s635_s16), 31  ;;  %v802_v5 = vmov 0.0   ;;  %s961_s12 = smov (!%p242_p5, %s791_s12), 1  ;;  %vm803_vm0 = vmmov 0   ;;  %v310_v19 = vlaneseq }
   0xd   : > { %776 = vset.pattern.permute.xlu1 %v801_v0  ;;  %775 = vset.pattern.permute.xlu0 %v801_v0  ;;  %s636_s17 = sshll.u32 %s959_s16, 3  ;;  %s869_s21 = sshll.u32 %s961_s12, 2  ;;  %v804_v25 = vmov 1.0|1.0  }
   0xe   : > { %s849_s20 = scalar_lea.vmem %s951_s1, %s636_s17  ;;  %707 = vmatprep.subr.bf16.mxu0 %v802_v5  ;;  %727 = vmatprep.subr.bf16.mxu1 %v802_v5  ;;  %s247_s24 = scalar_lea.vmem %s950_s0, %s869_s21  ;;  %v882_v22 = vand.u32 127, %v310_v19 }
   0xf   : > { %v291_v1 = vld [vmem:[%s849_s20 + $0x70] sm:$0xff]  ;;  %v289_v2 = vld [vmem:[%s849_s20 + $0x60] sm:$0xff]  ;;  %v292_v3 = vld [vmem:[%s849_s20 + $0x78] sm:$0xff]  ;;  %723 = vmatprep.mubr.msk.bf16.mxu0 %vm803_vm0, %v802_v5  ;;  %743 = vmatprep.mubr.msk.bf16.mxu1 %vm803_vm0, %v802_v5  ;;  %s262_s27 = scalar_lea.vmem %s952_s2, %s869_s21  ;;  %s272_s30 = scalar_lea.vmem %s953_s3, %s869_s21 }
  0x10   : > { %355 = vperm.xlu0 %775, %v291_v1   ;;  %349 = vperm.xlu1 %776, %v289_v2   ;;  %v290_v4 = vld [vmem:[%s849_s20 + $0x68] sm:$0xff]  ;;  %v288_v6 = vld [vmem:[%s849_s20 + $0x58] sm:$0xff]  ;;  %v287_v7 = vld [vmem:[%s849_s20 + $0x50] sm:$0xff] }
  0x11   : > { %v286_v8 = vld [vmem:[%s849_s20 + $0x48] sm:$0xff]  ;;  %v285_v9 = vld [vmem:[%s849_s20 + $0x40] sm:$0xff]  ;;  %v284_v10 = vld [vmem:[%s849_s20 + $0x38] sm:$0xff] }
  0x12   : > { %v283_v11 = vld [vmem:[%s849_s20 + $0x30] sm:$0xff]  ;;  %v282_v12 = vld [vmem:[%s849_s20 + $0x28] sm:$0xff]  ;;  %v281_v13 = vld [vmem:[%s849_s20 + $0x20] sm:$0xff] }
  0x13   : > { %v280_v14 = vld [vmem:[%s849_s20 + $0x18] sm:$0xff]  ;;  %v279_v15 = vld [vmem:[%s849_s20 + $0x10] sm:$0xff]  ;;  %v278_v16 = vld [vmem:[%s849_s20 + $0x8] sm:$0xff] }
  0x14   : > { %358 = vperm.xlu0 %775, %v292_v3   ;;  %352 = vperm.xlu1 %776, %v290_v4   ;;  %v277_v17 = vld [vmem:[%s849_s20] sm:$0xff] }
  0x15   : > { %v877_v18 = vld [vmem:[%s247_s24] sm:$0xf] }
  0x16   : > { %v416_v34 = vpack.c.bf16 %v877_v18, %v877_v18  ;;  %v500_v42 = vld [vmem:[%s262_s27] sm:$0xf] }
  0x18   : > { %346 = vperm.xlu1 %776, %v288_v6   ;;  %343 = vperm.xlu0 %775, %v287_v7   ;;  %v417_v37 = vunpack.c.l.bf16 %v416_v34 }
  0x1a   : > { %v418_v40 = vsub.f32 %v877_v18, %v417_v37 }
  0x1c   : > { %340 = vperm.xlu1 %776, %v286_v8   ;;  %337 = vperm.xlu0 %775, %v285_v9   ;;  %v419_v41 = vpack.c.bf16 %v418_v40, %v418_v40 }
  0x20   : > { %334 = vperm.xlu1 %776, %v284_v10   ;;  %331 = vperm.xlu0 %775, %v283_v11  }
  0x24   : > { %328 = vperm.xlu1 %776, %v282_v12   ;;  %325 = vperm.xlu0 %775, %v281_v13  }
  0x28   : > { %322 = vperm.xlu1 %776, %v280_v14   ;;  %319 = vperm.xlu0 %775, %v279_v15  }
  0x2c   : > { %316 = vperm.xlu1 %776, %v278_v16   ;;  %313 = vperm.xlu0 %775, %v277_v17  }
  0x30   : > { %503 = vperm.xlu0 %775, %v877_v18  }
  0x8b   : > { %v356_v20 = vpop.permute.xlu0 %355  ;;  %v350_v21 = vpop.permute.xlu1 %349 }
  0x8c   : > { %vm374_vm1 = vcmp.eq.s32.totalorder %v356_v20, %v882_v22  ;;  %vm372_vm4 = vcmp.eq.s32.totalorder %v350_v21, %v882_v22 }
  0x8f   : > { %v359_v23 = vpop.permute.xlu0 %358  ;;  %v353_v24 = vpop.permute.xlu1 %352 }
  0x90   : > { %vm375_vm2 = vcmp.eq.s32.totalorder %v359_v23, %v882_v22  ;;  %vm373_vm5 = vcmp.eq.s32.totalorder %v353_v24, %v882_v22 }
  0x91   : > { %vm655_vm3 = vmpackc.low %vm375_vm2, %vm374_vm1 }
  0x92   : > { %708 = vmatpush3.bf16.msk.msra.mxu0 %vm655_vm3, %v804_v25  ;;  %728 = vmatpush3.bf16.msk.msra.mxu1 %vm655_vm3, %v804_v25  ;;  %vm657_vm6 = vmpackc.low %vm373_vm5, %vm372_vm4 }
  0x93   : > { %v347_v26 = vpop.permute.xlu1 %346  ;;  %v344_v27 = vpop.permute.xlu0 %343  ;;  %709 = vmatprep.subr.bf16.mxu0 %v802_v5  ;;  %729 = vmatprep.subr.bf16.mxu1 %v802_v5 }
  0x94   : > { %vm371_vm7 = vcmp.eq.s32.totalorder %v347_v26, %v882_v22  ;;  %vm370_vm8 = vcmp.eq.s32.totalorder %v344_v27, %v882_v22 }
  0x95   : > { %vm659_vm9 = vmpackc.low %vm371_vm7, %vm370_vm8 }
  0x96   : > { %710 = vmatpush3.bf16.msk.msra.mxu0 %vm657_vm6, %v804_v25  ;;  %730 = vmatpush3.bf16.msk.msra.mxu1 %vm657_vm6, %v804_v25 }
  0x97   : > { %v341_v28 = vpop.permute.xlu1 %340  ;;  %v338_v29 = vpop.permute.xlu0 %337  ;;  %711 = vmatprep.subr.bf16.mxu0 %v802_v5  ;;  %731 = vmatprep.subr.bf16.mxu1 %v802_v5 }
  0x98   : > { %vm369_vm10 = vcmp.eq.s32.totalorder %v341_v28, %v882_v22  ;;  %vm368_vm11 = vcmp.eq.s32.totalorder %v338_v29, %v882_v22 }
  0x99   : > { %vm661_vm12 = vmpackc.low %vm369_vm10, %vm368_vm11 }
  0x9a   : > { %712 = vmatpush3.bf16.msk.msra.mxu0 %vm659_vm9, %v804_v25  ;;  %732 = vmatpush3.bf16.msk.msra.mxu1 %vm659_vm9, %v804_v25 }
  0x9b   : > { %v335_v30 = vpop.permute.xlu1 %334  ;;  %v332_v31 = vpop.permute.xlu0 %331  ;;  %713 = vmatprep.subr.bf16.mxu0 %v802_v5  ;;  %733 = vmatprep.subr.bf16.mxu1 %v802_v5 }
  0x9c   : > { %vm367_vm13 = vcmp.eq.s32.totalorder %v335_v30, %v882_v22  ;;  %vm366_vm14 = vcmp.eq.s32.totalorder %v332_v31, %v882_v22 }
  0x9d   : > { %vm663_vm15 = vmpackc.low %vm367_vm13, %vm366_vm14 }
  0x9e   : > { %714 = vmatpush3.bf16.msk.msra.mxu0 %vm661_vm12, %v804_v25  ;;  %734 = vmatpush3.bf16.msk.msra.mxu1 %vm661_vm12, %v804_v25 }
  0x9f   : > { %v329_v32 = vpop.permute.xlu1 %328  ;;  %v326_v33 = vpop.permute.xlu0 %325  ;;  %715 = vmatprep.subr.bf16.mxu0 %v802_v5  ;;  %735 = vmatprep.subr.bf16.mxu1 %v802_v5 }
  0xa0   : > { %vm365_vm0 = vcmp.eq.s32.totalorder %v329_v32, %v882_v22  ;;  %vm364_vm1 = vcmp.eq.s32.totalorder %v326_v33, %v882_v22 }
  0xa1   : > { %vm665_vm2 = vmpackc.low %vm365_vm0, %vm364_vm1 }
  0xa2   : > { %716 = vmatpush3.bf16.msk.msra.mxu0 %vm663_vm15, %v804_v25  ;;  %736 = vmatpush3.bf16.msk.msra.mxu1 %vm663_vm15, %v804_v25 }
  0xa3   : > { %v323_v35 = vpop.permute.xlu1 %322  ;;  %v320_v36 = vpop.permute.xlu0 %319  ;;  %717 = vmatprep.subr.bf16.mxu0 %v802_v5  ;;  %737 = vmatprep.subr.bf16.mxu1 %v802_v5 }
  0xa4   : > { %vm363_vm3 = vcmp.eq.s32.totalorder %v323_v35, %v882_v22  ;;  %vm362_vm4 = vcmp.eq.s32.totalorder %v320_v36, %v882_v22 }
  0xa5   : > { %vm667_vm5 = vmpackc.low %vm363_vm3, %vm362_vm4 }
  0xa6   : > { %718 = vmatpush3.bf16.msk.msra.mxu0 %vm665_vm2, %v804_v25  ;;  %738 = vmatpush3.bf16.msk.msra.mxu1 %vm665_vm2, %v804_v25 }
  0xa7   : > { %v317_v38 = vpop.permute.xlu1 %316  ;;  %v314_v39 = vpop.permute.xlu0 %313  ;;  %719 = vmatprep.subr.bf16.mxu0 %v802_v5  ;;  %739 = vmatprep.subr.bf16.mxu1 %v802_v5 }
  0xa8   : > { %vm361_vm6 = vcmp.eq.s32.totalorder %v317_v38, %v882_v22  ;;  %vm360_vm7 = vcmp.eq.s32.totalorder %v314_v39, %v882_v22 }
  0xa9   : > { %vm669_vm8 = vmpackc.low %vm361_vm6, %vm360_vm7 }
  0xaa   : > { %720 = vmatpush3.bf16.msk.msra.mxu0 %vm667_vm5, %v804_v25  ;;  %740 = vmatpush3.bf16.msk.msra.mxu1 %vm667_vm5, %v804_v25 }
  0xab   : > { %721 = vmatprep.subr.bf16.mxu0 %v802_v5  ;;  %741 = vmatprep.subr.bf16.mxu1 %v802_v5  ;;  %v504_v43 = vpop.permute.xlu0 %503 }
  0xac   : > { %v506_v46 = vmul.f32 %v504_v43, %v500_v42 }
  0xae   : > { %722 = vmatpush3.bf16.msk.msra.mxu0 %vm669_vm8, %v804_v25  ;;  %742 = vmatpush3.bf16.msk.msra.mxu1 %vm669_vm8, %v804_v25 }
  0xb1   : > { %724 = vmatmul.mubr.bf16.vlgmr.msra.gmra.mxu0 %v419_v41  ;;  %744 = vmatmul.mubr.bf16.vlgmr.msra.gmra.mxu1 %v416_v34 }
 0x171   : > { %v454_v44 = vpop.f32.mrf.mxu0  ;;  %v494_v45 = vpop.f32.mrf.mxu1 }
 0x172   : > { %v495_v47 = vadd.f32 %v494_v45, %v454_v44 }
 0x173   : > { %v725_v48 = vpop.f32.mrf.mxu0  ;;  %v745_v49 = vpop.f32.mrf.mxu1 }
 0x174   : > { %v507_v50 = vadd.f32 %v506_v46, %v495_v47 }
 0x175   : > { %v457_v51 = vpop.f32.mrf.mxu0  ;;  %v497_v52 = vpop.f32.mrf.mxu1 }
 0x176   : > { %508 = vst [vmem:[%s272_s30] sm:$0xf] %v507_v50 }
 0x177   : > { %v726_v53 = vpop.f32.mrf.mxu0  ;;  %v746_v54 = vpop.f32.mrf.mxu1 }
 0x178 PF: > { %s13_s14 = sadd.s32 1, %s799_s14   ;;  %s954_s12 = smov %s795_s13 }
 0x179   : > { %p10_p6 = scmp.ge.s32.totalorder %s13_s14, 4   ;;  %s955_s13 = smov %s957_s15 }
 0x17b   :  { %12 = sbr.rel (!%p10_p6) target bundleno = 2 (0x2), region = 68 }

</bundles_post_ra>
